<compile_context>
chip_gen: v6e
topology: v6e:2x2x1
jax: 0.10.0
libtpu: 0.0.40
codegen_flags: <defaults>
</compile_context>

<pallas_src>
import math
import functools

import jax
import jax.numpy as jnp
import numpy as np
from jax.experimental import pallas as pl
from jax.experimental.pallas import tpu as pltpu


def decoder_layer_kernel(
    x_ref, e_ref, maskb_ref,
    wq_ref, wkv_ref, woh_ref, w1_ref, w2_ref, vecs_ref,
    o_ref,
    *, heads, d_k, eps,
):
    x = x_ref[0]              # (Sq, D)
    e = e_ref[0]              # (Sk, D)
    mask_bias = maskb_ref[0]  # (1, Sk) additive: 0 keep, -1e9 masked
    vecs = vecs_ref[...]      # (10, D) packed bias / norm vectors

    Sq, D = x.shape
    Sk = e.shape[0]

    a2, b2 = vecs[0:1], vecs[1:2]
    a3, b3 = vecs[2:3], vecs[3:4]
    bq, bk = vecs[4:5], vecs[5:6]
    bv, bo = vecs[6:7], vecs[7:8]
    bb1, bb2 = vecs[8:9], vecs[9:10]

    def torch_norm(t, alpha, bias):
        # Matches Norm.forward: alpha*(t - mean)/(std + eps) + bias, with
        # torch's UNBIASED std (divide by D-1).  Exact reciprocal: scale errors
        # here would propagate multiplicatively through the whole layer.
        m = jnp.mean(t, axis=-1, keepdims=True)
        c = t - m
        var = jnp.sum(c * c, axis=-1, keepdims=True) * (1.0 / (D - 1))
        std = jnp.sqrt(var)
        return alpha * c * pl.reciprocal(std + eps, approx=False) + bias

    # ---- norm_2 ----
    xn = torch_norm(x, a2, b2)

    # ---- projections (K and V fused into one matmul) ----
    q = jnp.dot(xn, wq_ref[...], preferred_element_type=jnp.float32) + bq   # (Sq, D)
    q = q * (1.0 / math.sqrt(d_k))          # fold score scale into q
    kv = jnp.dot(e, wkv_ref[...], preferred_element_type=jnp.float32)        # (Sk, 2D)
    k = kv[:, :D] + bk                                                        # (Sk, D)
    v = kv[:, D:] + bv                                                        # (Sk, D)

    # Build head-batched operands once (pure data movement, no per-head matmuls).
    def split_heads(t):   # (S, D) -> (H, S, d_k)
        return jnp.stack([t[:, h * d_k:(h + 1) * d_k] for h in range(heads)], axis=0)

    qh = split_heads(q)   # (H, Sq, d_k)
    kh = split_heads(k)   # (H, Sk, d_k)
    vh = split_heads(v)   # (H, Sk, d_k)

    # Scores for all heads in ONE batched dot_general (contraction over d_k,
    # no explicit kh.T), then additive mask bias.
    s = jnp.einsum('hqd,hkd->hqk', qh, kh,
                   preferred_element_type=jnp.float32)        # (H, Sq, Sk)
    s = s + mask_bias                                         # (1,Sk) broadcasts

    m = jnp.max(s, axis=-1, keepdims=True)
    p = jnp.exp(s - m)
    p = p * pl.reciprocal(jnp.sum(p, axis=-1, keepdims=True), approx=True)

    # Context + output projection: concat(heads) @ Wo  ==  sum_h ctx_h @ Wo[h],
    # so the lane-axis concatenate disappears entirely.
    ctx = jnp.einsum('hqk,hkd->hqd', p, vh,
                     preferred_element_type=jnp.float32)      # (H, Sq, d_k)
    per_head = jnp.einsum('hqd,hde->hqe', ctx, woh_ref[...],
                          preferred_element_type=jnp.float32) # (H, Sq, D)
    attn = jnp.sum(per_head, axis=0) + bo                     # (Sq, D)

    x1 = xn + attn   # dropout_2 is identity in eval

    # ---- norm_3 ----
    x2n = torch_norm(x1, a3, b3)

    # ---- feed forward (d_ff zero-padded; exact since ReLU(0)=0) ----
    h1 = jnp.maximum(
        jnp.dot(x2n, w1_ref[...], preferred_element_type=jnp.float32) + bb1, 0.0)
    ff = jnp.dot(h1, w2_ref[...], preferred_element_type=jnp.float32) + bb2

    o_ref[0] = x2n + ff   # dropout_3 is identity in eval


def decoder_layer(x, e_outputs, src_mask, params, *, heads, eps=1e-5):
    B, Sq, D = x.shape
    _, Sk, _ = e_outputs.shape
    d_k = D // heads
    f32 = jnp.float32

    # Additive mask bias computed once at the JAX level (0 keep, -1e9 masked).
    mask_bias = jnp.where(src_mask == 0, -1e9, 0.0).astype(f32).reshape(B, 1, Sk)

    # ---- pre-arrange / fuse parameters (trace-time, negligible cost) ----
    wq = params["wq"].astype(f32)                                      # (D, D)
    wkv = jnp.concatenate([params["wk"], params["wv"]], axis=1).astype(f32)  # (D, 2D)
    wo_h = params["wo"].reshape(heads, d_k, D).astype(f32)             # (H, d_k, D)

    dff = params["w1"].shape[1]
    dff_p = D   # pad hidden dim to D so its bias packs with the other (D,) vectors
    assert dff <= dff_p
    w1p = jnp.zeros((D, dff_p), f32).at[:, :dff].set(params["w1"])
    w2p = jnp.zeros((dff_p, D), f32).at[:dff, :].set(params["w2"])
    bb1p = jnp.zeros((dff_p,), f32).at[:dff].set(params["bb1"].reshape(-1))

    vecs = jnp.stack([
        params["a2"].reshape(-1), params["b2"].reshape(-1),
        params["a3"].reshape(-1), params["b3"].reshape(-1),
        params["bq"].reshape(-1), params["bk"].reshape(-1),
        params["bv"].reshape(-1), params["bo"].reshape(-1),
        bb1p, params["bb2"].reshape(-1),
    ], axis=0).astype(f32)                                             # (10, D)

    def batch_spec(shape):
        nd = len(shape)
        return pl.BlockSpec((1,) + tuple(shape[1:]),
                            lambda b, _nd=nd: (b,) + (0,) * (_nd - 1))

    def shared_spec(shape):
        nd = len(shape)
        return pl.BlockSpec(tuple(shape), lambda b, _nd=nd: (0,) * _nd)

    shared = [wq, wkv, wo_h, w1p, w2p, vecs]

    in_specs = (
        [batch_spec(x.shape), batch_spec(e_outputs.shape), batch_spec(mask_bias.shape)]
        + [shared_spec(p.shape) for p in shared]
    )

    kernel = functools.partial(decoder_layer_kernel, heads=heads, d_k=d_k, eps=eps)

    return pl.pallas_call(
        kernel,
        out_shape=jax.ShapeDtypeStruct((B, Sq, D), f32),
        grid=(B,),
        in_specs=in_specs,
        out_specs=pl.BlockSpec((1, Sq, D), lambda b: (b, 0, 0)),
        compiler_params=pltpu.CompilerParams(dimension_semantics=("parallel",)),
    )(x, e_outputs, mask_bias, wq, wkv, wo_h, w1p, w2p, vecs)


def reference(x, e, mask, P, *, heads, eps=1e-5):
    """Pure-JAX replica of the PyTorch forward (eval mode)."""
    B, Sq, D = x.shape
    Sk = e.shape[1]
    d_k = D // heads

    def norm(t, a, b):
        m = t.mean(-1, keepdims=True)
        c = t - m
        std = jnp.sqrt((c * c).sum(-1, keepdims=True) / (D - 1))
        return a * c / (std + eps) + b

    xn = norm(x, P["a2"], P["b2"])
    q = xn @ P["wq"] + P["bq"]
    k = e @ P["wk"] + P["bk"]
    v = e @ P["wv"] + P["bv"]
    qh = q.reshape(B, Sq, heads, d_k).transpose(0, 2, 1, 3)
    kh = k.reshape(B, Sk, heads, d_k).transpose(0, 2, 1, 3)
    vh = v.reshape(B, Sk, heads, d_k).transpose(0, 2, 1, 3)
    s = jnp.einsum("bhqd,bhkd->bhqk", qh, kh) / math.sqrt(d_k)
    s = jnp.where(mask[:, None, None, :] == 0, -1e9, s)
    p = jax.nn.softmax(s, axis=-1)
    o = jnp.einsum("bhqk,bhkd->bhqd", p, vh).transpose(0, 2, 1, 3).reshape(B, Sq, D)
    attn = o @ P["wo"] + P["bo"]
    x1 = xn + attn
    x2n = norm(x1, P["a3"], P["b3"])
    ff = jnp.maximum(x2n @ P["w1"] + P["bb1"], 0.0) @ P["w2"] + P["bb2"]
    return x2n + ff


def make_params(key, d_model, d_ff):
    ks = jax.random.split(key, 12)
    f = jnp.float32

    def w(k, shape):
        return (0.1 * jax.random.normal(k, shape)).astype(f)

    return {
        # linear weights stored (in, out); biases stored (1, out)
        "wq": w(ks[0], (d_model, d_model)), "bq": w(ks[1], (1, d_model)),
        "wk": w(ks[2], (d_model, d_model)), "bk": w(ks[3], (1, d_model)),
        "wv": w(ks[4], (d_model, d_model)), "bv": w(ks[5], (1, d_model)),
        "wo": w(ks[6], (d_model, d_model)), "bo": w(ks[7], (1, d_model)),
        # Norm params as in module __init__: ones / zeros
        "a2": jnp.ones((1, d_model), f), "b2": jnp.zeros((1, d_model), f),
        "a3": jnp.ones((1, d_model), f), "b3": jnp.zeros((1, d_model), f),
        # FeedForward (d_ff = 16)
        "w1": w(ks[8], (d_model, d_ff)), "bb1": w(ks[9], (1, d_ff)),
        "w2": w(ks[10], (d_ff, d_model)), "bb2": w(ks[11], (1, d_model)),
    }


if __name__ == "__main__":
    B, Sq, Sk, D, HEADS, DFF = 2, 8, 8, 32, 4, 16

    key = jax.random.PRNGKey(0)
    kx, ke, kp = jax.random.split(key, 3)

    x = jax.random.normal(kx, (B, Sq, D), dtype=jnp.float32)
    e_outputs = jax.random.normal(ke, (B, Sk, D), dtype=jnp.float32)
    # deterministic mask: last two encoder positions are masked out
    src_mask = jnp.concatenate(
        [jnp.ones((B, Sk - 2), jnp.float32), jnp.zeros((B, 2), jnp.float32)], axis=-1
    )

    params = make_params(kp, D, DFF)

    out = decoder_layer(x, e_outputs, src_mask, params, heads=HEADS)
    out = jax.block_until_ready(out)

    ref = reference(x, e_outputs, src_mask, params, heads=HEADS)
    # Tolerance slightly looser than pure-f32 because the softmax normalisation
    # uses the approximate EUP reciprocal (pl.reciprocal(..., approx=True)).
    np.testing.assert_allclose(np.asarray(out), np.asarray(ref), rtol=2e-3, atol=2e-3)

    print("KERNEL_OK")
</pallas_src>

<mosaic_0001>
module attributes {stable_mosaic.version = 11 : i64} {
  func.func @decoder_layer_kernel(%arg0: i32, %arg1: memref<1x8x32xf32, #tpu.memory_space<vmem>>, %arg2: memref<1x8x32xf32, #tpu.memory_space<vmem>>, %arg3: memref<1x1x8xf32, #tpu.memory_space<vmem>>, %arg4: memref<32x32xf32, #tpu.memory_space<vmem>>, %arg5: memref<32x64xf32, #tpu.memory_space<vmem>>, %arg6: memref<4x8x32xf32, #tpu.memory_space<vmem>>, %arg7: memref<32x32xf32, #tpu.memory_space<vmem>>, %arg8: memref<32x32xf32, #tpu.memory_space<vmem>>, %arg9: memref<10x32xf32, #tpu.memory_space<vmem>>, %arg10: memref<1x8x32xf32, #tpu.memory_space<vmem>>) attributes {dimension_semantics = [#tpu.dimension_semantics<parallel>], iteration_bounds = array<i64: 2>, scalar_prefetch = 0 : i64, scratch_operands = 0 : i64, tpu.core_type = #tpu.core_type<tc>, window_params = [{transform_indices = @transform_0, window_bounds = array<i64: 1, 8, 32>}, {transform_indices = @transform_1, window_bounds = array<i64: 1, 8, 32>}, {transform_indices = @transform_2, window_bounds = array<i64: 1, 1, 8>}, {pipeline_mode = #tpu.pipeline_mode<synchronous>, transform_indices = @transform_3, window_bounds = array<i64: 32, 32>}, {pipeline_mode = #tpu.pipeline_mode<synchronous>, transform_indices = @transform_4, window_bounds = array<i64: 32, 64>}, {pipeline_mode = #tpu.pipeline_mode<synchronous>, transform_indices = @transform_5, window_bounds = array<i64: 4, 8, 32>}, {pipeline_mode = #tpu.pipeline_mode<synchronous>, transform_indices = @transform_6, window_bounds = array<i64: 32, 32>}, {pipeline_mode = #tpu.pipeline_mode<synchronous>, transform_indices = @transform_7, window_bounds = array<i64: 32, 32>}, {pipeline_mode = #tpu.pipeline_mode<synchronous>, transform_indices = @transform_8, window_bounds = array<i64: 10, 32>}, {transform_indices = @transform_9, window_bounds = array<i64: 1, 8, 32>}]} {
    %c0 = arith.constant 0 : index
    %c0_0 = arith.constant 0 : index
    %c0_1 = arith.constant 0 : index
    %0 = vector.load %arg1[%c0, %c0_0, %c0_1] : memref<1x8x32xf32, #tpu.memory_space<vmem>>, vector<1x8x32xf32>
    %1 = vector.shape_cast %0 : vector<1x8x32xf32> to vector<8x32xf32>
    %c0_2 = arith.constant 0 : index
    %c0_3 = arith.constant 0 : index
    %c0_4 = arith.constant 0 : index
    %2 = vector.load %arg2[%c0_2, %c0_3, %c0_4] : memref<1x8x32xf32, #tpu.memory_space<vmem>>, vector<1x8x32xf32>
    %3 = vector.shape_cast %2 : vector<1x8x32xf32> to vector<8x32xf32>
    %c0_5 = arith.constant 0 : index
    %c0_6 = arith.constant 0 : index
    %c0_7 = arith.constant 0 : index
    %4 = vector.load %arg3[%c0_5, %c0_6, %c0_7] : memref<1x1x8xf32, #tpu.memory_space<vmem>>, vector<1x1x8xf32>
    %5 = vector.shape_cast %4 : vector<1x1x8xf32> to vector<1x8xf32>
    %c0_8 = arith.constant 0 : index
    %c0_9 = arith.constant 0 : index
    %6 = vector.load %arg9[%c0_8, %c0_9] : memref<10x32xf32, #tpu.memory_space<vmem>>, vector<10x32xf32>
    %7 = vector.extract_strided_slice %6 {offsets = [0, 0], sizes = [1, 32], strides = [1, 1]} : vector<10x32xf32> to vector<1x32xf32>
    %8 = vector.extract_strided_slice %6 {offsets = [1, 0], sizes = [1, 32], strides = [1, 1]} : vector<10x32xf32> to vector<1x32xf32>
    %9 = vector.extract_strided_slice %6 {offsets = [2, 0], sizes = [1, 32], strides = [1, 1]} : vector<10x32xf32> to vector<1x32xf32>
    %10 = vector.extract_strided_slice %6 {offsets = [3, 0], sizes = [1, 32], strides = [1, 1]} : vector<10x32xf32> to vector<1x32xf32>
    %11 = vector.extract_strided_slice %6 {offsets = [4, 0], sizes = [1, 32], strides = [1, 1]} : vector<10x32xf32> to vector<1x32xf32>
    %12 = vector.extract_strided_slice %6 {offsets = [5, 0], sizes = [1, 32], strides = [1, 1]} : vector<10x32xf32> to vector<1x32xf32>
    %13 = vector.extract_strided_slice %6 {offsets = [6, 0], sizes = [1, 32], strides = [1, 1]} : vector<10x32xf32> to vector<1x32xf32>
    %14 = vector.extract_strided_slice %6 {offsets = [7, 0], sizes = [1, 32], strides = [1, 1]} : vector<10x32xf32> to vector<1x32xf32>
    %15 = vector.extract_strided_slice %6 {offsets = [8, 0], sizes = [1, 32], strides = [1, 1]} : vector<10x32xf32> to vector<1x32xf32>
    %16 = vector.extract_strided_slice %6 {offsets = [9, 0], sizes = [1, 32], strides = [1, 1]} : vector<10x32xf32> to vector<1x32xf32>
    %cst = arith.constant dense<0.000000e+00> : vector<8xf32>
    %17 = vector.multi_reduction <add>, %1, %cst [1] : vector<8x32xf32> to vector<8xf32>
    %18 = vector.shape_cast %17 : vector<8xf32> to vector<8x1xf32>
    %cst_10 = arith.constant 3.200000e+01 : f32
    %19 = vector.broadcast %cst_10 : f32 to vector<8x1xf32>
    %20 = arith.divf %18, %19 : vector<8x1xf32>
    %21 = vector.broadcast %20 : vector<8x1xf32> to vector<8x32xf32>
    %22 = arith.subf %1, %21 : vector<8x32xf32>
    %23 = arith.mulf %22, %22 : vector<8x32xf32>
    %cst_11 = arith.constant dense<0.000000e+00> : vector<8xf32>
    %24 = vector.multi_reduction <add>, %23, %cst_11 [1] : vector<8x32xf32> to vector<8xf32>
    %25 = vector.shape_cast %24 : vector<8xf32> to vector<8x1xf32>
    %cst_12 = arith.constant 0.0322580636 : f32
    %26 = vector.broadcast %cst_12 : f32 to vector<8x1xf32>
    %27 = arith.mulf %25, %26 : vector<8x1xf32>
    %28 = math.sqrt %27 : vector<8x1xf32>
    %29 = vector.broadcast %7 : vector<1x32xf32> to vector<8x32xf32>
    %30 = arith.mulf %29, %22 : vector<8x32xf32>
    %cst_13 = arith.constant 9.99999974E-6 : f32
    %31 = vector.broadcast %cst_13 : f32 to vector<8x1xf32>
    %32 = arith.addf %28, %31 : vector<8x1xf32>
    %33 = tpu.reciprocal %32 : vector<8x1xf32> -> vector<8x1xf32>
    %34 = vector.broadcast %33 : vector<8x1xf32> to vector<8x32xf32>
    %35 = arith.mulf %30, %34 : vector<8x32xf32>
    %36 = vector.broadcast %8 : vector<1x32xf32> to vector<8x32xf32>
    %37 = arith.addf %35, %36 : vector<8x32xf32>
    %c0_14 = arith.constant 0 : index
    %c0_15 = arith.constant 0 : index
    %38 = vector.load %arg4[%c0_14, %c0_15] : memref<32x32xf32, #tpu.memory_space<vmem>>, vector<32x32xf32>
    %cst_16 = arith.constant dense<0.000000e+00> : vector<8x32xf32>
    %39 = tpu.matmul %37, %38, %cst_16 {dimension_numbers = #tpu.dot_dimension_numbers<[1], [0], [0], [1], [0, 0, 1, 1], [], []>} : vector<8x32xf32>, vector<32x32xf32>, vector<8x32xf32> -> vector<8x32xf32>
    %40 = vector.broadcast %11 : vector<1x32xf32> to vector<8x32xf32>
    %41 = arith.addf %39, %40 : vector<8x32xf32>
    %cst_17 = arith.constant 0.353553385 : f32
    %42 = vector.broadcast %cst_17 : f32 to vector<8x32xf32>
    %43 = arith.mulf %41, %42 : vector<8x32xf32>
    %c0_18 = arith.constant 0 : index
    %c0_19 = arith.constant 0 : index
    %44 = vector.load %arg5[%c0_18, %c0_19] : memref<32x64xf32, #tpu.memory_space<vmem>>, vector<32x64xf32>
    %cst_20 = arith.constant dense<0.000000e+00> : vector<8x64xf32>
    %45 = tpu.matmul %3, %44, %cst_20 {dimension_numbers = #tpu.dot_dimension_numbers<[1], [0], [0], [1], [0, 0, 1, 1], [], []>} : vector<8x32xf32>, vector<32x64xf32>, vector<8x64xf32> -> vector<8x64xf32>
    %46 = vector.extract_strided_slice %45 {offsets = [0, 0], sizes = [8, 32], strides = [1, 1]} : vector<8x64xf32> to vector<8x32xf32>
    %47 = vector.broadcast %12 : vector<1x32xf32> to vector<8x32xf32>
    %48 = arith.addf %46, %47 : vector<8x32xf32>
    %49 = vector.extract_strided_slice %45 {offsets = [0, 32], sizes = [8, 32], strides = [1, 1]} : vector<8x64xf32> to vector<8x32xf32>
    %50 = vector.broadcast %13 : vector<1x32xf32> to vector<8x32xf32>
    %51 = arith.addf %49, %50 : vector<8x32xf32>
    %52 = vector.extract_strided_slice %43 {offsets = [0, 0], sizes = [8, 8], strides = [1, 1]} : vector<8x32xf32> to vector<8x8xf32>
    %53 = vector.extract_strided_slice %43 {offsets = [0, 8], sizes = [8, 8], strides = [1, 1]} : vector<8x32xf32> to vector<8x8xf32>
    %54 = vector.extract_strided_slice %43 {offsets = [0, 16], sizes = [8, 8], strides = [1, 1]} : vector<8x32xf32> to vector<8x8xf32>
    %55 = vector.extract_strided_slice %43 {offsets = [0, 24], sizes = [8, 8], strides = [1, 1]} : vector<8x32xf32> to vector<8x8xf32>
    %56 = vector.shape_cast %52 : vector<8x8xf32> to vector<1x8x8xf32>
    %57 = vector.shape_cast %53 : vector<8x8xf32> to vector<1x8x8xf32>
    %58 = vector.shape_cast %54 : vector<8x8xf32> to vector<1x8x8xf32>
    %59 = vector.shape_cast %55 : vector<8x8xf32> to vector<1x8x8xf32>
    %60 = tpu.concatenate %56, %57, %58, %59 in 0 : vector<1x8x8xf32>, vector<1x8x8xf32>, vector<1x8x8xf32>, vector<1x8x8xf32> -> vector<4x8x8xf32>
    %61 = vector.extract_strided_slice %48 {offsets = [0, 0], sizes = [8, 8], strides = [1, 1]} : vector<8x32xf32> to vector<8x8xf32>
    %62 = vector.extract_strided_slice %48 {offsets = [0, 8], sizes = [8, 8], strides = [1, 1]} : vector<8x32xf32> to vector<8x8xf32>
    %63 = vector.extract_strided_slice %48 {offsets = [0, 16], sizes = [8, 8], strides = [1, 1]} : vector<8x32xf32> to vector<8x8xf32>
    %64 = vector.extract_strided_slice %48 {offsets = [0, 24], sizes = [8, 8], strides = [1, 1]} : vector<8x32xf32> to vector<8x8xf32>
    %65 = vector.shape_cast %61 : vector<8x8xf32> to vector<1x8x8xf32>
    %66 = vector.shape_cast %62 : vector<8x8xf32> to vector<1x8x8xf32>
    %67 = vector.shape_cast %63 : vector<8x8xf32> to vector<1x8x8xf32>
    %68 = vector.shape_cast %64 : vector<8x8xf32> to vector<1x8x8xf32>
    %69 = tpu.concatenate %65, %66, %67, %68 in 0 : vector<1x8x8xf32>, vector<1x8x8xf32>, vector<1x8x8xf32>, vector<1x8x8xf32> -> vector<4x8x8xf32>
    %70 = vector.extract_strided_slice %51 {offsets = [0, 0], sizes = [8, 8], strides = [1, 1]} : vector<8x32xf32> to vector<8x8xf32>
    %71 = vector.extract_strided_slice %51 {offsets = [0, 8], sizes = [8, 8], strides = [1, 1]} : vector<8x32xf32> to vector<8x8xf32>
    %72 = vector.extract_strided_slice %51 {offsets = [0, 16], sizes = [8, 8], strides = [1, 1]} : vector<8x32xf32> to vector<8x8xf32>
    %73 = vector.extract_strided_slice %51 {offsets = [0, 24], sizes = [8, 8], strides = [1, 1]} : vector<8x32xf32> to vector<8x8xf32>
    %74 = vector.shape_cast %70 : vector<8x8xf32> to vector<1x8x8xf32>
    %75 = vector.shape_cast %71 : vector<8x8xf32> to vector<1x8x8xf32>
    %76 = vector.shape_cast %72 : vector<8x8xf32> to vector<1x8x8xf32>
    %77 = vector.shape_cast %73 : vector<8x8xf32> to vector<1x8x8xf32>
    %78 = tpu.concatenate %74, %75, %76, %77 in 0 : vector<1x8x8xf32>, vector<1x8x8xf32>, vector<1x8x8xf32>, vector<1x8x8xf32> -> vector<4x8x8xf32>
    "tpu.trace_start"() <{level = 10 : i32, message = "hqd,hkd->hqk"}> : () -> ()
    %cst_21 = arith.constant dense<0.000000e+00> : vector<4x8x8xf32>
    %79 = tpu.matmul %60, %69, %cst_21 {dimension_numbers = #tpu.dot_dimension_numbers<[2], [2], [1], [1], [0, 0, 0, 1, 1, 1], [0], [0]>} : vector<4x8x8xf32>, vector<4x8x8xf32>, vector<4x8x8xf32> -> vector<4x8x8xf32>
    "tpu.trace_stop"() : () -> ()
    %80 = vector.shape_cast %5 : vector<1x8xf32> to vector<1x1x8xf32>
    %81 = vector.broadcast %80 : vector<1x1x8xf32> to vector<4x8x8xf32>
    %82 = arith.addf %79, %81 : vector<4x8x8xf32>
    %cst_22 = arith.constant dense<0xFF800000> : vector<4x8xf32>
    %83 = vector.multi_reduction <maximumf>, %82, %cst_22 [2] : vector<4x8x8xf32> to vector<4x8xf32>
    %84 = vector.shape_cast %83 : vector<4x8xf32> to vector<4x8x1xf32>
    %85 = vector.broadcast %84 : vector<4x8x1xf32> to vector<4x8x8xf32>
    %86 = arith.subf %82, %85 : vector<4x8x8xf32>
    %87 = math.exp %86 : vector<4x8x8xf32>
    %cst_23 = arith.constant dense<0.000000e+00> : vector<4x8xf32>
    %88 = vector.multi_reduction <add>, %87, %cst_23 [2] : vector<4x8x8xf32> to vector<4x8xf32>
    %89 = vector.shape_cast %88 : vector<4x8xf32> to vector<4x8x1xf32>
    %90 = tpu.reciprocal %89 {approx = true} : vector<4x8x1xf32> -> vector<4x8x1xf32>
    %91 = vector.broadcast %90 : vector<4x8x1xf32> to vector<4x8x8xf32>
    %92 = arith.mulf %87, %91 : vector<4x8x8xf32>
    "tpu.trace_start"() <{level = 10 : i32, message = "hqk,hkd->hqd"}> : () -> ()
    %cst_24 = arith.constant dense<0.000000e+00> : vector<4x8x8xf32>
    %93 = tpu.matmul %92, %78, %cst_24 {dimension_numbers = #tpu.dot_dimension_numbers<[2], [1], [1], [2], [0, 0, 0, 1, 1, 2], [0], [0]>} : vector<4x8x8xf32>, vector<4x8x8xf32>, vector<4x8x8xf32> -> vector<4x8x8xf32>
    "tpu.trace_stop"() : () -> ()
    %c0_25 = arith.constant 0 : index
    %c0_26 = arith.constant 0 : index
    %c0_27 = arith.constant 0 : index
    %94 = vector.load %arg6[%c0_25, %c0_26, %c0_27] : memref<4x8x32xf32, #tpu.memory_space<vmem>>, vector<4x8x32xf32>
    "tpu.trace_start"() <{level = 10 : i32, message = "hqd,hde->hqe"}> : () -> ()
    %cst_28 = arith.constant dense<0.000000e+00> : vector<4x8x32xf32>
    %95 = tpu.matmul %93, %94, %cst_28 {dimension_numbers = #tpu.dot_dimension_numbers<[2], [1], [1], [2], [0, 0, 0, 1, 1, 2], [0], [0]>} : vector<4x8x8xf32>, vector<4x8x32xf32>, vector<4x8x32xf32> -> vector<4x8x32xf32>
    "tpu.trace_stop"() : () -> ()
    %cst_29 = arith.constant dense<0.000000e+00> : vector<8x32xf32>
    %96 = vector.multi_reduction <add>, %95, %cst_29 [0] : vector<4x8x32xf32> to vector<8x32xf32>
    %97 = vector.broadcast %14 : vector<1x32xf32> to vector<8x32xf32>
    %98 = arith.addf %96, %97 : vector<8x32xf32>
    %99 = arith.addf %37, %98 : vector<8x32xf32>
    %cst_30 = arith.constant dense<0.000000e+00> : vector<8xf32>
    %100 = vector.multi_reduction <add>, %99, %cst_30 [1] : vector<8x32xf32> to vector<8xf32>
    %101 = vector.shape_cast %100 : vector<8xf32> to vector<8x1xf32>
    %cst_31 = arith.constant 3.200000e+01 : f32
    %102 = vector.broadcast %cst_31 : f32 to vector<8x1xf32>
    %103 = arith.divf %101, %102 : vector<8x1xf32>
    %104 = vector.broadcast %103 : vector<8x1xf32> to vector<8x32xf32>
    %105 = arith.subf %99, %104 : vector<8x32xf32>
    %106 = arith.mulf %105, %105 : vector<8x32xf32>
    %cst_32 = arith.constant dense<0.000000e+00> : vector<8xf32>
    %107 = vector.multi_reduction <add>, %106, %cst_32 [1] : vector<8x32xf32> to vector<8xf32>
    %108 = vector.shape_cast %107 : vector<8xf32> to vector<8x1xf32>
    %cst_33 = arith.constant 0.0322580636 : f32
    %109 = vector.broadcast %cst_33 : f32 to vector<8x1xf32>
    %110 = arith.mulf %108, %109 : vector<8x1xf32>
    %111 = math.sqrt %110 : vector<8x1xf32>
    %112 = vector.broadcast %9 : vector<1x32xf32> to vector<8x32xf32>
    %113 = arith.mulf %112, %105 : vector<8x32xf32>
    %cst_34 = arith.constant 9.99999974E-6 : f32
    %114 = vector.broadcast %cst_34 : f32 to vector<8x1xf32>
    %115 = arith.addf %111, %114 : vector<8x1xf32>
    %116 = tpu.reciprocal %115 : vector<8x1xf32> -> vector<8x1xf32>
    %117 = vector.broadcast %116 : vector<8x1xf32> to vector<8x32xf32>
    %118 = arith.mulf %113, %117 : vector<8x32xf32>
    %119 = vector.broadcast %10 : vector<1x32xf32> to vector<8x32xf32>
    %120 = arith.addf %118, %119 : vector<8x32xf32>
    %c0_35 = arith.constant 0 : index
    %c0_36 = arith.constant 0 : index
    %121 = vector.load %arg7[%c0_35, %c0_36] : memref<32x32xf32, #tpu.memory_space<vmem>>, vector<32x32xf32>
    %cst_37 = arith.constant dense<0.000000e+00> : vector<8x32xf32>
    %122 = tpu.matmul %120, %121, %cst_37 {dimension_numbers = #tpu.dot_dimension_numbers<[1], [0], [0], [1], [0, 0, 1, 1], [], []>} : vector<8x32xf32>, vector<32x32xf32>, vector<8x32xf32> -> vector<8x32xf32>
    %123 = vector.broadcast %15 : vector<1x32xf32> to vector<8x32xf32>
    %124 = arith.addf %122, %123 : vector<8x32xf32>
    %cst_38 = arith.constant 0.000000e+00 : f32
    %125 = vector.broadcast %cst_38 : f32 to vector<8x32xf32>
    %126 = arith.maximumf %124, %125 : vector<8x32xf32>
    %c0_39 = arith.constant 0 : index
    %c0_40 = arith.constant 0 : index
    %127 = vector.load %arg8[%c0_39, %c0_40] : memref<32x32xf32, #tpu.memory_space<vmem>>, vector<32x32xf32>
    %cst_41 = arith.constant dense<0.000000e+00> : vector<8x32xf32>
    %128 = tpu.matmul %126, %127, %cst_41 {dimension_numbers = #tpu.dot_dimension_numbers<[1], [0], [0], [1], [0, 0, 1, 1], [], []>} : vector<8x32xf32>, vector<32x32xf32>, vector<8x32xf32> -> vector<8x32xf32>
    %129 = vector.broadcast %16 : vector<1x32xf32> to vector<8x32xf32>
    %130 = arith.addf %128, %129 : vector<8x32xf32>
    %131 = arith.addf %120, %130 : vector<8x32xf32>
    %c0_42 = arith.constant 0 : index
    %c0_43 = arith.constant 0 : index
    %c0_44 = arith.constant 0 : index
    %132 = vector.load %arg10[%c0_42, %c0_43, %c0_44] : memref<1x8x32xf32, #tpu.memory_space<vmem>>, vector<1x8x32xf32>
    %133 = vector.shape_cast %132 : vector<1x8x32xf32> to vector<8x32xf32>
    %134 = vector.shape_cast %131 : vector<8x32xf32> to vector<1x8x32xf32>
    tpu.vector_store %arg10[%c0_42, %c0_43, %c0_44], %134 {strides = array<i32>} : memref<1x8x32xf32, #tpu.memory_space<vmem>>, vector<1x8x32xf32>,
    return
  }
  func.func @transform_0(%arg0: i32) -> (i32, i32, i32) {
    %c0_i32 = arith.constant 0 : i32
    %c0_i32_0 = arith.constant 0 : i32
    %c0_i32_1 = arith.constant 0 : i32
    return %arg0, %c0_i32, %c0_i32_0 : i32, i32, i32
  }
  func.func @transform_1(%arg0: i32) -> (i32, i32, i32) {
    %c0_i32 = arith.constant 0 : i32
    %c0_i32_0 = arith.constant 0 : i32
    %c0_i32_1 = arith.constant 0 : i32
    return %arg0, %c0_i32, %c0_i32_0 : i32, i32, i32
  }
  func.func @transform_2(%arg0: i32) -> (i32, i32, i32) {
    %c0_i32 = arith.constant 0 : i32
    %c0_i32_0 = arith.constant 0 : i32
    %c0_i32_1 = arith.constant 0 : i32
    return %arg0, %c0_i32, %c0_i32_0 : i32, i32, i32
  }
  func.func @transform_3(%arg0: i32) -> (i32, i32) {
    %c0_i32 = arith.constant 0 : i32
    %c0_i32_0 = arith.constant 0 : i32
    %c0_i32_1 = arith.constant 0 : i32
    return %c0_i32, %c0_i32_0 : i32, i32
  }
  func.func @transform_4(%arg0: i32) -> (i32, i32) {
    %c0_i32 = arith.constant 0 : i32
    %c0_i32_0 = arith.constant 0 : i32
    %c0_i32_1 = arith.constant 0 : i32
    return %c0_i32, %c0_i32_0 : i32, i32
  }
  func.func @transform_5(%arg0: i32) -> (i32, i32, i32) {
    %c0_i32 = arith.constant 0 : i32
    %c0_i32_0 = arith.constant 0 : i32
    %c0_i32_1 = arith.constant 0 : i32
    %c0_i32_2 = arith.constant 0 : i32
    return %c0_i32, %c0_i32_0, %c0_i32_1 : i32, i32, i32
  }
  func.func @transform_6(%arg0: i32) -> (i32, i32) {
    %c0_i32 = arith.constant 0 : i32
    %c0_i32_0 = arith.constant 0 : i32
    %c0_i32_1 = arith.constant 0 : i32
    return %c0_i32, %c0_i32_0 : i32, i32
  }
  func.func @transform_7(%arg0: i32) -> (i32, i32) {
    %c0_i32 = arith.constant 0 : i32
    %c0_i32_0 = arith.constant 0 : i32
    %c0_i32_1 = arith.constant 0 : i32
    return %c0_i32, %c0_i32_0 : i32, i32
  }
  func.func @transform_8(%arg0: i32) -> (i32, i32) {
    %c0_i32 = arith.constant 0 : i32
    %c0_i32_0 = arith.constant 0 : i32
    %c0_i32_1 = arith.constant 0 : i32
    return %c0_i32, %c0_i32_0 : i32, i32
  }
  func.func @transform_9(%arg0: i32) -> (i32, i32, i32) {
    %c0_i32 = arith.constant 0 : i32
    %c0_i32_0 = arith.constant 0 : i32
    %c0_i32_1 = arith.constant 0 : i32
    return %arg0, %c0_i32, %c0_i32_0 : i32, i32, i32
  }
}

</mosaic_0001>

<bundles_post_ra>
// kernel: tpu_custom_call.1
= control target key start
LH: loop header
LB: loop body
LE: loop exit
PB: predicated region body
PF: predicated region fallthrough
CT: control target
= control target key end

     0   :  { %s3200_s0 = inlined_call_operand.hbm [shape: f32[2,8,32], index: 0, kind: input, shape index: {}]   ;;  %s3201_s1 = inlined_call_operand.hbm [shape: f32[2,8,32], index: 1, kind: input, shape index: {}]   ;;  %s3202_s2 = inlined_call_operand.vmem [shape: f32[2,1,8], index: 2, kind: input, shape index: {}]   ;;  %s3203_s3 = inlined_call_operand.hbm [shape: f32[32,32], index: 3, kind: input, shape index: {}]   ;;  %s3204_s4 = inlined_call_operand.hbm [shape: f32[32,64], index: 4, kind: input, shape index: {}]   ;;  %s3205_s5 = inlined_call_operand.hbm [shape: f32[4,8,32], index: 5, kind: input, shape index: {}]   ;;  %s3206_s6 = inlined_call_operand.hbm [shape: f32[32,32], index: 6, kind: input, shape index: {}]   ;;  %s3207_s7 = inlined_call_operand.hbm [shape: f32[32,32], index: 7, kind: input, shape index: {}]   ;;  %s3208_s8 = inlined_call_operand.hbm [shape: f32[10,32], index: 8, kind: input, shape index: {}]   ;;  %s3209_s9 = inlined_call_operand.hbm [shape: f32[2,8,32], index: 9, kind: output, shape index: {}]  }
   0x1   :  { %3214 = sst [smem:[#allocation24_spill]] %s3203_s3 }
   0x2   :  { %3215 = sst [smem:[#allocation25_spill]] %s3204_s4 }
   0x3   :  { %3216 = sst [smem:[#allocation26_spill]] %s3205_s5 }
   0x4   :  { %3217 = sst [smem:[#allocation27_spill]] %s3206_s6 }
   0x5   :  { %3218 = sst [smem:[#allocation28_spill]] %s3207_s7 }
   0x6   :  { %3219 = sst [smem:[#allocation29_spill]] %s3208_s8 }
   0x7   :  { %14 = vsyncpa [#allocation3], 0 }
   0x8   :  { %16 = vsyncpa [#allocation3 + $0x1], 0 }
   0x9   :  { %17 = vsyncpa [#allocation6], 0 }
   0xa   :  { %19 = vsyncpa [#allocation6 + $0x1], 0 }
   0xb   :  { %20 = vsyncpa [#allocation9], 0 }
   0xc   :  { %21 = vsyncpa [#allocation12], 0 }
   0xd   :  { %22 = vsyncpa [#allocation15], 0 }
   0xe   :  { %23 = vsyncpa [#allocation4], 0 }
   0xf   :  { %25 = vsyncpa [#allocation4 + $0x1], 0  ;;  %s2752_s30 = smov 0   ;;  %s2754_s10 = smov 0  }
  0x10   :  { %s2756_s11 = smov 0   ;;  %s2758_s12 = smov 0  }
  0x11 LB: > { %s2684_s13 = smov [#allocation7]   ;;  %s2773_s15 = sadd.s32 4294967295, %s2682_s12   ;;  %s2682_s12 = sphi %s2758_s12, %s3250_s12   ;;  %s2678_s11 = sphi %s2756_s11, %s3249_s11   ;;  %s2674_s10 = sphi %s2754_s10, %s3248_s10   ;;  %s2670_s30 = sphi %s2752_s30, %s3247_s30  }
  0x12   : > { %s278_s14 = sshll.u32 %s2684_s13, 4  ;;  %p2046_p0 = scmp.ge.s32.totalorder %s2682_s12, 1  ;;  %s279_s14 = int_to_ptr.vmem [resolvable:$true] %s278_s14 }
  0x13   : > { %p3210_p1 = scmp.eq.s32.totalorder %s2773_s15, 0  ;;  %p266_p2 = scmp.lt.s32.totalorder %s2682_s12, 3 }
  0x14   : > { %s2685_s17 = smov [#allocation8]   ;;  %s2686_s20 = smov [#allocation11]  }
  0x15   : > { %p2778_p3 = pnand %p2046_p0, %p266_p2  ;;  %s291_s18 = sshll.u32 %s2685_s17, 4  ;;  %s2791_s18 = int_to_ptr.vmem [resolvable:$true] %s291_s18 }
  0x16   : > { %s317_s21 = sshll.u32 %s2686_s20, 4  ;;  %s2397_s23 = scalar_lea.vmem %s279_s14, 512  ;;  %s2793_s21 = int_to_ptr.vmem [resolvable:$true] %s317_s21 }
  0x17   : > { %s3220_s16 = scalar_select %p2778_p3, 1, 0 }
  0x18   : > { %p2271_p5 = pneg %p2778_p3  ;;  %p2398_p8 = scmp.ne.s32.totalorder %s279_s14, %s2397_s23 }
  0x19   : > { %p2405_p11 = scmp.lt.s32.totalorder %s279_s14, %s279_s14  ;;  %p2406_p12 = scmp.lt.s32.totalorder %s2397_s23, %s2397_s23 }
  0x1a   : > { %p2787_p6 = pnand %p2271_p5, %p3210_p1 }
  0x1b   : > { %p2407_p13 = por %p2406_p12, %p2405_p11 }
  0x1c   : > { %p2797_p7 = pneg %p2787_p6 }
  0x1e   : > { %p2400_p9 = pnand %p2398_p8, %p2797_p7 }
  0x20   : > { %p2401_p10 = pneg %p2400_p9 }
  0x22   : > { %p2408_p0 = pnand %p2407_p13, %p2401_p10 }
  0x24   : > { %2411 = shalt.err (!%p2408_p0)
}
  0x25   : > { %s2687_s24 = smov 128   ;;  %s2688_s25 = smov 8  }
  0x26   : > { %s3223_s3 = sld [smem:[#allocation24_spill]]  ;;  %s2423_s28 = scalar_lea.vmem %s2791_s18, 512 }
  0x27   : > { %p2424_p2 = scmp.ne.s32.totalorder %s2791_s18, %s2423_s28  ;;  %p2431_p9 = scmp.lt.s32.totalorder %s2791_s18, %s2791_s18 }
  0x28   : > { %p2432_p10 = scmp.lt.s32.totalorder %s2423_s28, %s2423_s28 }
  0x29   : > { %p2426_p5 = pnand %p2424_p2, %p2797_p7 }
  0x2a   : > { %p2433_p11 = por %p2432_p10, %p2431_p9 }
  0x2b   : > { %p2427_p8 = pneg %p2426_p5 }
  0x2c   : > { %2274 = dma.hbm_to_vmem [thread:$0]  (!%p2787_p6), %s3223_s3, 512, %s279_s14, [#allocation6], %s2687_s24, %s2687_s24, %s2688_s25  }
  0x2d   : > { %p2434_p12 = pnand %p2433_p11, %p2427_p8 }
  0x2f   : > { %2437 = shalt.err (!%p2434_p12)
}
  0x30   : > { %s3224_s4 = sld [smem:[#allocation25_spill]]  ;;  %s2449_s14 = scalar_lea.vmem %s2793_s21, 512 }
  0x31   : > { %p2450_p13 = scmp.ne.s32.totalorder %s2793_s21, %s2449_s14  ;;  %p2457_p5 = scmp.lt.s32.totalorder %s2793_s21, %s2793_s21 }
  0x32   : > { %p2458_p8 = scmp.lt.s32.totalorder %s2449_s14, %s2449_s14 }
  0x33   : > { %p2452_p0 = pnand %p2450_p13, %p2797_p7 }
  0x34   : > { %p2459_p9 = por %p2458_p8, %p2457_p5 }
  0x35   : > { %p2453_p2 = pneg %p2452_p0 }
  0x36   : > { %2277 = dma.hbm_to_vmem [thread:$0]  (!%p2787_p6), %s3224_s4, 512, %s2791_s18, [#allocation9], %s2687_s24, %s2687_s24, %s2688_s25  }
  0x37   : > { %p2460_p10 = pnand %p2459_p9, %p2453_p2 }
  0x39   : > { %2463 = shalt.err (!%p2460_p10)
}
  0x3a   : > { %s3225_s6 = sld [smem:[#allocation27_spill]]  ;;  %s2689_s18 = smov [#allocation10]  }
  0x3b   : > { %s304_s23 = sshll.u32 %s2689_s18, 4  ;;  %s2690_s26 = smov [#allocation13]   ;;  %s305_s23 = int_to_ptr.vmem [resolvable:$true] %s304_s23 }
  0x3c   : > { %s330_s27 = sshll.u32 %s2690_s26, 4  ;;  %s2475_s28 = scalar_lea.vmem %s305_s23, 512  ;;  %s331_s27 = int_to_ptr.vmem [resolvable:$true] %s330_s27 }
  0x3d   : > { %p2476_p11 = scmp.ne.s32.totalorder %s305_s23, %s2475_s28  ;;  %p2483_p0 = scmp.lt.s32.totalorder %s305_s23, %s305_s23 }
  0x3e   : > { %p2484_p2 = scmp.lt.s32.totalorder %s2475_s28, %s2475_s28 }
  0x3f   : > { %p2478_p12 = pnand %p2476_p11, %p2797_p7 }
  0x40   : > { %2283 = dma.hbm_to_vmem [thread:$0]  (!%p2787_p6), %s3225_s6, 512, %s2793_s21, [#allocation12], %s2687_s24, %s2687_s24, %s2688_s25  }
  0x41   : > { %p2479_p13 = pneg %p2478_p12  ;;  %p2485_p5 = por %p2484_p2, %p2483_p0 }
  0x43   : > { %p2486_p8 = pnand %p2485_p5, %p2479_p13 }
  0x45   : > { %2489 = shalt.err (!%p2486_p8)
}
  0x46   : > { %s3226_s5 = sld [smem:[#allocation26_spill]]  ;;  %s2501_s13 = scalar_lea.vmem %s331_s27, 512 }
  0x47   : > { %p2502_p9 = scmp.ne.s32.totalorder %s331_s27, %s2501_s13  ;;  %p2509_p12 = scmp.lt.s32.totalorder %s331_s27, %s331_s27 }
  0x48   : > { %p2510_p0 = scmp.lt.s32.totalorder %s2501_s13, %s2501_s13 }
  0x49   : > { %p2504_p10 = pnand %p2502_p9, %p2797_p7 }
  0x4a   : > { %p2511_p13 = por %p2510_p0, %p2509_p12 }
  0x4b   : > { %p2505_p11 = pneg %p2504_p10 }
  0x4c   : > { %2280 = dma.hbm_to_vmem [thread:$0]  (!%p2787_p6), %s3226_s5, 512, %s305_s23, [#allocation9], %s2687_s24, %s2687_s24, %s2688_s25  }
  0x4d   : > { %p2512_p2 = pnand %p2511_p13, %p2505_p11 }
  0x4f   : > { %2515 = shalt.err (!%p2512_p2)
}
  0x50   : > { %s3227_s7 = sld [smem:[#allocation28_spill]]  ;;  %s2691_s20 = smov [#allocation14]  }
  0x51   : > { %s343_s18 = sshll.u32 %s2691_s20, 4  ;;  %s344_s18 = int_to_ptr.vmem [resolvable:$true] %s343_s18 }
  0x52   : > { %s2527_s23 = scalar_lea.vmem %s344_s18, 256  ;;  %p2535_p10 = scmp.lt.s32.totalorder %s344_s18, %s344_s18 }
  0x53   : > { %p2528_p5 = scmp.ne.s32.totalorder %s344_s18, %s2527_s23  ;;  %p2536_p11 = scmp.lt.s32.totalorder %s2527_s23, %s2527_s23 }
  0x55   : > { %p2530_p8 = pnand %p2528_p5, %p2797_p7  ;;  %p2537_p12 = por %p2536_p11, %p2535_p10 }
  0x56   : > { %2286 = dma.hbm_to_vmem [thread:$0]  (!%p2787_p6), %s3227_s7, 512, %s331_s27, [#allocation12], %s2687_s24, %s2687_s24, %s2688_s25  }
  0x57   : > { %p2531_p9 = pneg %p2530_p8 }
  0x59   : > { %p2538_p0 = pnand %p2537_p12, %p2531_p9 }
  0x5b   : > { %2541 = shalt.err (!%p2538_p0)
}
  0x5c   : > { %s3228_s8 = sld [smem:[#allocation29_spill]]  ;;  %s2045_s19 = sadd.s32 4294967294, %s2682_s12  }
  0x5d   : > { %s2873_s22 = sadd.s32 1, %s2682_s12   ;;  %s38_s21 = sadd.s32 1, %s2678_s11 }
  0x5e   : > { %s35_s28 = ssub.s32 %s2682_s12, %s2873_s22  ;;  %p45_p13 = scmp.ne.s32.totalorder %s2678_s11, %s2674_s10 }
  0x5f   : > { %p36_p7 = scmp.eq.s32.totalorder %s35_s28, 0  ;;  %p46_p2 = scmp.eq.s32.totalorder %s2682_s12, 0 }
  0x60   : > { %p51_p5 = scmp.ne.s32.totalorder %s2674_s10, %s2670_s30  ;;  %p253_p9 = scmp.eq.s32.totalorder %s2773_s15, 1 }
  0x61   : > { %s2884_s29 = scalar_select %p36_p7, %s2678_s11, %s38_s21  }
  0x62   : > { %2289 = dma.hbm_to_vmem [thread:$0]  (!%p2787_p6), %s3228_s8, 256, %s344_s18, [#allocation15], %s2687_s24, %s2687_s24, %s2688_s25  }
  0x63   : > { %p2886_p8 = por %p46_p2, %p45_p13  ;;  %p2892_p6 = por %p3210_p1, %p51_p5 }
  0x64   : > { %p259_p10 = scmp.eq.s32.totalorder %s2045_s19, 1  ;;  %p2307_p11 = scmp.lt.s32.totalorder %s2682_s12, 2 }
  0x65   : > { %s3230_s24 = scalar_select %p2892_p6, 1, 0 }
  0x66   : > { %s357_s25 = sand.u32 1, %s2678_s11   ;;  %p2899_p12 = por %p253_p9, %p45_p13 }
  0x67   : > { %p2903_p0 = por %p259_p10, %p51_p5  ;;  %s2907_s20 = sshll.u32 %s357_s25, 3 }
  0x68   : > { %s3231_s14 = scalar_select %p2899_p12, 1, 0 }
  0x69   : > { %s3232_s17 = scalar_select %p2903_p0, 1, 0 }
  0x6a   : > { %s2055_s18 = sshll.u32 %s2682_s12, 7  ;;  %s361_s19 = scalar_lea.vmem [#allocation2], %s2907_s20 }
  0x6b   : > { %s2913_s27 = scalar_lea.hbm %s3200_s0, %s2055_s18  ;;  %s368_s28 = sshll.u32 %s361_s19, 4  ;;  %s2916_s28 = int_to_ptr.vmem [resolvable:$true] %s368_s28 }
  0x6c   : > { %p2920_p7 = pnand %p2307_p11, %p2886_p8  ;;  %s2927_s23 = scalar_lea.hbm %s3201_s1, %s2055_s18 }
  0x6d   : > { %s375_s26 = sand.u32 1, %s2682_s12   ;;  %s358_s5 = scalar_lea.sflag [#allocation3], %s357_s25 }
  0x6e   : > { %s2542_s6 = scalar_lea.hbm %s2913_s27, 128  ;;  %p2544_p2 = pneg %p2920_p7 }
  0x6f   : > { %p2543_p13 = scmp.ne.s32.totalorder %s2913_s27, %s2542_s6  ;;  %s2547_s7 = scalar_lea.hbm %s3200_s0, 256 }
  0x70   : > { %p2548_p9 = scmp.lt.s32.totalorder %s2913_s27, %s3200_s0  ;;  %p2549_p10 = scmp.lt.s32.totalorder %s2547_s7, %s2542_s6 }
  0x71   : > { %p2545_p5 = pnand %p2544_p2, %p2543_p13 }
  0x72   : > { %p2550_p11 = por %p2549_p10, %p2548_p9 }
  0x73   : > { %p2546_p8 = pneg %p2545_p5 }
  0x75   : > { %p2551_p4 = pnand %p2550_p11, %p2546_p8 }
  0x77   : > { %2554 = shalt.err (!%p2551_p4)
}
  0x78   : > { %s2555_s4 = scalar_lea.vmem %s2916_s28, 128  ;;  %s2692_s25 = smov [#allocation2]  }
  0x79   : > { %p2556_p1 = scmp.ne.s32.totalorder %s2916_s28, %s2555_s4  ;;  %s2560_s18 = sshll.u32 %s2692_s25, 4  ;;  %s2561_s18 = int_to_ptr.vmem [resolvable:$false] %s2560_s18 }
  0x7a   : > { %s2562_s13 = scalar_lea.vmem %s2561_s18, 256  ;;  %p2563_p0 = scmp.lt.s32.totalorder %s2916_s28, %s2561_s18 }
  0x7b   : > { %p2558_p13 = pnand %p2556_p1, %p2544_p2  ;;  %p2564_p12 = scmp.lt.s32.totalorder %s2562_s13, %s2555_s4 }
  0x7d   : > { %p2559_p5 = pneg %p2558_p13  ;;  %p2565_p6 = por %p2564_p12, %p2563_p0 }
  0x7f   : > { %p2566_p9 = pnand %p2565_p6, %p2559_p5 }
  0x81   : > { %2569 = shalt.err (!%p2566_p9)
}
  0x82   : > { %2293 = dma.hbm_to_vmem [thread:$0]  (!%p2920_p7), %s2913_s27, 128, %s2916_s28, %s358_s5  }
  0x83   : > { %s379_s6 = scalar_lea.vmem [#allocation5], %s2907_s20  ;;  %s376_s8 = scalar_lea.sflag [#allocation6], %s375_s26 }
  0x84   : > { %s386_s7 = sshll.u32 %s379_s6, 4  ;;  %s2570_s19 = scalar_lea.hbm %s2927_s23, 128  ;;  %s387_s7 = int_to_ptr.vmem [resolvable:$true] %s386_s7 }
  0x85   : > { %p2571_p1 = scmp.ne.s32.totalorder %s2927_s23, %s2570_s19  ;;  %s2575_s25 = scalar_lea.hbm %s3201_s1, 256 }
  0x86   : > { %p2576_p12 = scmp.lt.s32.totalorder %s2927_s23, %s3201_s1  ;;  %p2577_p0 = scmp.lt.s32.totalorder %s2575_s25, %s2570_s19 }
  0x87   : > { %p2573_p4 = pnand %p2571_p1, %p2544_p2 }
  0x88   : > { %p2578_p8 = por %p2577_p0, %p2576_p12 }
  0x89   : > { %p2574_p6 = pneg %p2573_p4 }
  0x8b   : > { %p2579_p10 = pnand %p2578_p8, %p2574_p6 }
  0x8d   : > { %2582 = shalt.err (!%p2579_p10)
}
  0x8e   : > { %s2583_s5 = scalar_lea.vmem %s387_s7, 128  ;;  %s2693_s20 = smov [#allocation5]  }
  0x8f   : > { %p2584_p11 = scmp.ne.s32.totalorder %s387_s7, %s2583_s5  ;;  %s2588_s27 = sshll.u32 %s2693_s20, 4  ;;  %s2589_s27 = int_to_ptr.vmem [resolvable:$false] %s2588_s27 }
  0x90   : > { %s2590_s28 = scalar_lea.vmem %s2589_s27, 256  ;;  %p2591_p9 = scmp.lt.s32.totalorder %s387_s7, %s2589_s27 }
  0x91   : > { %p2586_p13 = pnand %p2584_p11, %p2544_p2  ;;  %p2592_p1 = scmp.lt.s32.totalorder %s2590_s28, %s2583_s5 }
  0x93   : > { %p2587_p5 = pneg %p2586_p13  ;;  %p2593_p4 = por %p2592_p1, %p2591_p9 }
  0x95   : > { %p2594_p3 = pnand %p2593_p4, %p2587_p5 }
  0x97   : > { %2597 = shalt.err (!%p2594_p3)
}
  0x98   : > { %2296 = dma.hbm_to_vmem [thread:$0]  (!%p2920_p7), %s2927_s23, 128, %s387_s7, %s376_s8  }
  0x99   : > { %p3234_p6 = scmp.ne.s32.totalorder %s3220_s16, 0 }
  0x9a   : > { %s2978_s26 = sand.u32 (!%p3234_p6), 1, %s2674_s10   ;;  %p3235_p2 = scmp.ne.s32.totalorder (!%p3234_p6), %s3230_s24, 0 }
  0x9b   : > { %401 = sbr.rel (%p3234_p6) target bundleno = 2472 (0x9a8), region = 56  ;;  %s2981_s6 = sshll.u32 (!%p3234_p6), %s2978_s26, 3 }
  0x9c   : > { %s404_s19 = scalar_lea.sflag (!%p3234_p6), [#allocation3], %s2978_s26  ;;  %s407_s3 = scalar_lea.vmem (!%p3234_p6), [#allocation2], %s2981_s6 }
  0xa0   : > { %2641 = dma.done.wait (%p3235_p2), %s404_s19, 128  }
  0xa1   : > { %2643 = vsyncadd (%p3235_p2), %s404_s19, 4294967168  ;;  %s412_s16 = sand.u32 1, %s2773_s15   ;;  %s416_s23 = scalar_lea.vmem [#allocation5], %s2981_s6 }
  0xa2   : > { %s413_s21 = scalar_lea.sflag [#allocation6], %s412_s16 }
  0xa3   : > { %2645 = dma.done.wait (%p3235_p2), %s413_s21, 128  }
  0xa4   : > { %2647 = vsyncadd (%p3235_p2), %s413_s21, 4294967168  ;;  %p3236_p3 = scmp.eq.s32.totalorder %s2773_s15, 0 }
  0xa6   : > { %2649 = dma.done.wait (%p3236_p3), [#allocation6], 512   ;;  %p3237_p7 = pmov %p3236_p3 }
  0xa7   : > { %p3238_p12 = pmov %p3236_p3 }
  0xa8   : > { %2651 = vsyncadd (%p3237_p7), [#allocation6], 4294966784 }
  0xa9   : > { %2653 = dma.done.wait (%p3238_p12), [#allocation9], 1024   ;;  %p3239_p0 = pmov %p3236_p3 }
  0xab   : > { %2655 = vsyncadd (%p3239_p0), [#allocation9], 4294966272  ;;  %p3240_p8 = pmov %p3239_p0 }
  0xac   : > { %p3241_p10 = pmov %p3239_p0 }
  0xad   : > { %2657 = dma.done.wait (%p3240_p8), [#allocation12], 1024  }
  0xae   : > { %2659 = vsyncadd (%p3241_p10), [#allocation12], 4294966272  ;;  %p3242_p11 = pmov %p3239_p0 }
  0xaf   : > { %p3243_p13 = pmov %p3239_p0 }
  0xb0   : > { %2661 = dma.done.wait (%p3242_p11), [#allocation15], 256  }
  0xb1   : > { %2663 = vsyncadd (%p3243_p13), [#allocation15], 4294967040  ;;  %vm491_vm0 = vcmask 261120   ;;  %v486_v0 = vld [vmem:[%s407_s3] sm:$0xff]  ;;  %v2694_v7 = vmov 0.0   ;;  %v608_v8 = vld [vmem:[#allocation8 + $0x18] sm:$0xff]  ;;  %v510_v22 = vlaneseq }
  0xb2   : > { %v492_v1 = vsel %vm491_vm0, %v486_v0, 0.0  ;;  %2148 = vmatprep.subr.mxu1 %v2694_v7  ;;  %2137 = vmatprep.subr.mxu0 %v2694_v7  ;;  %v607_v9 = vld [vmem:[#allocation8 + $0x10] sm:$0xff]  ;;  %v606_v10 = vld [vmem:[#allocation8 + $0x8] sm:$0xff]  ;;  %v605_v11 = vld [vmem:[#allocation8] sm:$0xff]  ;;  %vm2695_vm1 = vmmov 0   ;;  %vm723_vm4 = vcmask 64512  }
  0xb3   : > { %493 = vadd.xlane.f32.xlu0 %v492_v1  ;;  %2149 = vmatpush3.msra.mxu1 %v608_v8  ;;  %v487_v12 = vld [vmem:[%s416_s23] sm:$0xff]  ;;  %v524_v15 = vld [vmem:[#allocation7 + $0x8] sm:$0xff]  ;;  %v523_v16 = vld [vmem:[#allocation7] sm:$0xff]  ;;  %v3032_v26 = vshrl.u32 %v510_v22, 7  ;;  %s2696_s24 = smov 120   ;;  %s2697_s7 = smov 112  }
  0xb4   : > { %2150 = vmatprep.subr.mxu1 %v2694_v7  ;;  %2156 = vmatprep.mubr.msk.f32.mxu1 %vm2695_vm1, %v2694_v7  ;;  %v526_v13 = vld [vmem:[#allocation7 + $0x18] sm:$0xff]  ;;  %v525_v14 = vld [vmem:[#allocation7 + $0x10] sm:$0xff]  ;;  %v3035_v28 = vld [vmem:[#allocation14] sm:$0xff]  ;;  %s2698_s8 = smov 104   ;;  %s2699_s4 = smov 32  }
  0xb5   : > { %2151 = vmatpush3.msra.mxu1 %v607_v9  ;;  %2145 = vmatprep.mubr.msk.f32.mxu0 %vm2695_vm1, %v2694_v7  ;;  %v512_v27 = vsub.s32 0, %v3032_v26  ;;  %v520_v30 = vsub.s32 1, %v3032_v26  ;;  %v684_v36 = vsub.s32 5, %v3032_v26  ;;  %v529_v42 = vsub.s32 4, %v3032_v26  ;;  %p483_p5 = scmp.lt.s32.totalorder %s2773_s15, 1  ;;  %s2700_s20 = smov 96  }
  0xb6   : > { %2152 = vmatprep.subr.mxu1 %v2694_v7  ;;  %2138 = vmatpush3.msra.mxu0 %v526_v13  ;;  %v689_v48 = vsub.s32 6, %v3032_v26  ;;  %s2090_s27 = sshll.u32 %s2773_s15, 7  ;;  %s482_s28 = scalar_lea.vmem [#allocation16], %s2981_s6 }
  0xb7   : > { %2153 = vmatpush3.msra.mxu1 %v606_v10  ;;  %2139 = vmatprep.subr.mxu0 %v2694_v7  ;;  %v513_v29 = vrot.slane %v3035_v28, %v512_v27  ;;  %v521_v32 = vrot.slane %v3035_v28, %v520_v30  ;;  %v685_v37 = vrot.slane %v3035_v28, %v684_v36  ;;  %s484_s25 = scalar_select %p483_p5, %s2773_s15, 1 }
  0xb8   : > { %2154 = vmatprep.subr.mxu1 %v2694_v7  ;;  %2140 = vmatpush3.msra.mxu0 %v525_v14  ;;  %v530_v43 = vrot.slane %v3035_v28, %v529_v42  ;;  %v690_v50 = vrot.slane %v3035_v28, %v689_v48  ;;  %s1886_s19 = sshll.u32 %s482_s28, 4  ;;  %s1884_s21 = scalar_lea.hbm %s3209_s9, %s2090_s27  ;;  %s1887_s19 = int_to_ptr.vmem [resolvable:$true] %s1886_s19 }
  0xb9   : > { %2155 = vmatpush3.msra.mxu1 %v605_v11  ;;  %2141 = vmatprep.subr.mxu0 %v2694_v7  ;;  %s485_s5 = scalar_lea.vmem %s3202_s2, %s484_s25  ;;  %s1873_s23 = scalar_lea.sflag [#allocation4], %s2978_s26 }
  0xba   : > { %2157 = vmatmul.mubr.msk.f32.vlgmr.msra.gmra.mxu1 %vm491_vm0, %v487_v12  ;;  %2164 = vmatprep.subr.mxu1 %v2694_v7  ;;  %v2070_v55 = vld [vmem:[%s485_s5] ss:$0 sm:$0xff]  ;;  %p3244_p1 = scmp.ne.s32.totalorder %s3231_s14, 0 }
  0xbb   : > { %2166 = vmatprep.mubr.msk.f32.mxu1 %vm2695_vm1, %v2694_v7  ;;  %2142 = vmatpush3.msra.mxu0 %v524_v15 }
  0xbc   : > { %2143 = vmatprep.subr.mxu0 %v2694_v7 }
  0xbd   : > { %2144 = vmatpush3.msra.mxu0 %v523_v16 }
  0xbe   : > { %2159 = vmatprep.subr.mxu0 %v2694_v7 }
 0x13c   : > { %v494_v2 = vpop.xlane.xlu0 %493 }
 0x13d   : > { %v496_v3 = vmul.f32 0.03125, %v494_v2 }
 0x13f   : > { %v497_v4 = vsub.f32 %v486_v0, %v496_v3 }
 0x141   : > { %v498_v5 = vmul.f32 %v497_v4, %v497_v4  ;;  %v514_v31 = vmul.f32 %v513_v29, %v497_v4 }
 0x143   : > { %v499_v6 = vsel %vm491_vm0, %v498_v5, 0.0 }
 0x144   : > { %500 = vadd.xlane.f32.xlu0 %v499_v6 }
 0x17a   : > { %v3052_v38 = vpop.f32.mrf.mxu1 }
 0x17b   : > { %v686_v39 = vadd.f32 %v685_v37, %v3052_v38 }
 0x17c   : > { %v2158_v40 = vpop.f32.mrf.mxu1 }
 0x17d   : > { %704 = vrot.lane.b32.xlu1 %v686_v39, %s2696_s24 }
 0x181   : > { %706 = vrot.lane.b32.xlu1 %v686_v39, %s2697_s7 }
 0x185   : > { %708 = vrot.lane.b32.xlu1 %v686_v39, %s2698_s8 }
 0x1cd   : > { %v501_v17 = vpop.xlane.xlu0 %500 }
 0x1ce   : > { %v502_v18 = vmul.f32 0.032258064, %v501_v17 }
 0x1d0   : > { %2362 = vrsqrt.f32 %v502_v18  ;;  %vm505_vm2 = vcmp.eq.f32.partialorder %v502_v18, inf  ;;  %v508_v21 = vand.u32 2147483648, %v502_v18  ;;  %vm507_vm3 = vcmp.eq.f32.partialorder %v502_v18, 0.0 }
 0x1dd   : > { %v2363_v19 = vpop.eup %2362 }
 0x1de   : > { %v504_v20 = vmul.f32 %v2363_v19, %v502_v18 }
 0x1e0   : > { %v506_v23 = vsel %vm505_vm2, %v502_v18, %v504_v20 }
 0x1e1   : > { %v509_v24 = vsel %vm507_vm3, %v508_v21, %v506_v23 }
 0x1e2   : > { %v515_v25 = vadd.f32 1e-05, %v509_v24 }
 0x1e4   : > { %2364 = vrcp.f32 %v515_v25 }
 0x1ef   : > { %v705_v41 = vpop.permute.xlu1 %704 }
 0x1f0   : > { %2165 = vmatpush3.xpose.msk.msra.mxu1 %vm723_vm4, %v705_v41 }
 0x1f1   : > { %v2365_v33 = vpop.eup %2364  ;;  %2174 = vmatprep.subr.mxu1 %v2694_v7 }
 0x1f2   : > { %v517_v34 = vmul.f32 %v2365_v33, %v514_v31 }
 0x1f3   : > { %v707_v49 = vpop.permute.xlu1 %706 }
 0x1f4   : > { %v3044_v35 = vadd.f32 %v521_v32, %v517_v34 }
 0x1f6   : > { %2146 = vmatmul.mubr.msk.f32.vlgmr.msra.gmra.mxu0 %vm491_vm0, %v3044_v35 }
 0x1f7   : > { %2161 = vmatprep.mubr.msk.f32.mxu0 %vm2695_vm1, %v2694_v7  ;;  %2160 = vmatpush3.xpose.msk.msra.mxu0 %vm723_vm4, %v686_v39  ;;  %v709_v51 = vpop.permute.xlu1 %708 }
 0x1f8   : > { %2169 = vmatprep.subr.mxu0 %v2694_v7 }
 0x2b6   : > { %v600_v44 = vpop.f32.mrf.mxu0 }
 0x2b7   : > { %v601_v45 = vadd.f32 %v600_v44, %v530_v43 }
 0x2b8   : > { %v2147_v46 = vpop.f32.mrf.mxu0 }
 0x2b9   : > { %v604_v47 = vmul.f32 0.35355338, %v601_v45 }
 0x2bb   : > { %699 = vrot.lane.b32.xlu1 %v604_v47, %s2697_s7  ;;  %697 = vrot.lane.b32.xlu0 %v604_v47, %s2696_s24 }
 0x2bc   : > { %2162 = vmatmul.mubr.msk.f32.vlgmr.msra.gmra.mxu0 %vm723_vm4, %v604_v47 }
 0x2bd   : > { %2170 = vmatpush3.xpose.msk.msra.mxu0 %vm723_vm4, %v707_v49  ;;  %2171 = vmatprep.mubr.msk.f32.mxu0 %vm2695_vm1, %v2694_v7 }
 0x2be   : > { %2179 = vmatprep.subr.mxu0 %v2694_v7 }
 0x2bf   : > { %701 = vrot.lane.b32.xlu1 %v604_v47, %s2698_s8 }
 0x2c3   : > { %692 = vrot.lane.b32.xlu1 %v690_v50, %s2699_s4 }
 0x32d   : > { %v700_v52 = vpop.permute.xlu1 %699  ;;  %v698_v53 = vpop.permute.xlu0 %697 }
 0x32e   : > { %2167 = vmatmul.mubr.msk.f32.vlgmr.msra.gmra.mxu1 %vm723_vm4, %v698_v53  ;;  %2172 = vmatmul.mubr.msk.f32.vlgmr.msra.gmra.mxu0 %vm723_vm4, %v700_v52 }
 0x32f   : > { %2175 = vmatpush3.xpose.msk.msra.mxu1 %vm723_vm4, %v709_v51  ;;  %2176 = vmatprep.mubr.msk.f32.mxu1 %vm2695_vm1, %v2694_v7 }
 0x330   : > { %2184 = vmatprep.subr.mxu1 %v2694_v7  ;;  %2181 = vmatprep.mubr.msk.f32.mxu0 %vm2695_vm1, %v2694_v7 }
 0x331   : > { %v702_v54 = vpop.permute.xlu1 %701 }
 0x332   : > { %2177 = vmatmul.mubr.msk.f32.vlgmr.msra.gmra.mxu1 %vm723_vm4, %v702_v54 }
 0x333   : > { %2186 = vmatprep.mubr.msk.f32.mxu1 %vm2695_vm1, %v2694_v7 }
 0x335   : > { %v693_v9 = vpop.permute.xlu1 %692 }
 0x336   : > { %v695_v10 = vadd.f32 %v693_v9, %v3052_v38  ;;  %v1673_v9 = vsub.s32 7, %v3032_v26 }
 0x37c   : > { %v794_v56 = vpop.f32.mrf.mxu0 }
 0x37d   : > { %v795_v57 = vadd.f32 %v2070_v55, %v794_v56  ;;  %v1368_v56 = vld [vmem:[#allocation10] sm:$0xff] }
 0x37e   : > { %v2163_v58 = vpop.f32.mrf.mxu0 }
 0x37f   : > { %v1020_v59 = vsel %vm723_vm4, %v795_v57, -inf }
 0x380   : > { %1021 = vmax.xlane.f32.xlu1 %v1020_v59 }
 0x3ee   : > { %v868_v60 = vpop.f32.mrf.mxu1  ;;  %v942_v61 = vpop.f32.mrf.mxu0 }
 0x3ef   : > { %v869_v62 = vadd.f32 %v2070_v55, %v868_v60  ;;  %v943_v63 = vadd.f32 %v2070_v55, %v942_v61  ;;  %v1370_v60 = vld [vmem:[#allocation10 + $0x10] sm:$0xff] }
 0x3f0   : > { %v2168_v0 = vpop.f32.mrf.mxu1  ;;  %v2173_v1 = vpop.f32.mrf.mxu0 }
 0x3f1   : > { %v1023_v2 = vsel %vm723_vm4, %v869_v62, -inf  ;;  %v1026_v3 = vsel %vm723_vm4, %v943_v63, -inf }
 0x3f2   : > { %1024 = vmax.xlane.f32.xlu0 %v1023_v2  ;;  %v1016_v4 = vpop.f32.mrf.mxu1  ;;  %1027 = vmax.xlane.f32.xlu1 %v1026_v3 }
 0x3f3   : > { %v1017_v5 = vadd.f32 %v2070_v55, %v1016_v4  ;;  %v1369_v55 = vld [vmem:[#allocation10 + $0x8] sm:$0xff] }
 0x3f4   : > { %v2178_v6 = vpop.f32.mrf.mxu1 }
 0x3f5   : > { %v1029_v8 = vsel %vm723_vm4, %v1017_v5, -inf }
 0x3f6   : > { %1030 = vmax.xlane.f32.xlu0 %v1029_v8 }
 0x403   : > { %711 = vrot.lane.b32.xlu1 %v695_v10, %s2696_s24  ;;  %s2598_s24 = scalar_lea.vmem %s1887_s19, 128 }
 0x404   : > { %p2599_p9 = scmp.ne.s32.totalorder %s1887_s19, %s2598_s24 }
 0x406   : > { %p2600_p4 = pnand %p2599_p9, %p3244_p1 }
 0x407   : > { %715 = vrot.lane.b32.xlu1 %v695_v10, %s2698_s8 }
 0x408   : > { %p2601_p6 = pneg %p2600_p4 }
 0x409   : > { %v1022_v11 = vpop.xlane.xlu1 %1021 }
 0x40a   : > { %v1032_v22 = vsub.f32 %v795_v57, %v1022_v11  ;;  %v1371_v57 = vld [vmem:[#allocation10 + $0x18] sm:$0xff] }
 0x40c   : > { %713 = vrot.lane.b32.xlu0 %v695_v10, %s2697_s7  ;;  %v1036_v29 = vmul.f32 1.442695, %v1032_v22  ;;  %s2701_s7 = smov [#allocation16]  }
 0x40d   : > { %s2602_s15 = sshll.u32 %s2701_s7, 4  ;;  %s2603_s15 = int_to_ptr.vmem [resolvable:$false] %s2602_s15 }
 0x40e   : > { %s2604_s6 = scalar_lea.vmem %s2603_s15, 256  ;;  %p2605_p2 = scmp.lt.s32.totalorder %s1887_s19, %s2603_s15 }
 0x40f   : > { %p2606_p3 = scmp.lt.s32.totalorder %s2604_s6, %s2598_s24 }
 0x410   : > { %1064 = vrot.lane.b32.xlu0 %v695_v10, %s2700_s20 }
 0x411   : > { %p2607_p7 = por %p2606_p3, %p2605_p2 }
 0x413   : > { %p2608_p12 = pnand %p2607_p7, %p2601_p6 }
 0x47b   : > { %v1025_v12 = vpop.xlane.xlu0 %1024  ;;  %v1028_v13 = vpop.xlane.xlu1 %1027 }
 0x47c   : > { %v1033_v14 = vsub.f32 %v869_v62, %v1025_v12  ;;  %v1034_v15 = vsub.f32 %v943_v63, %v1028_v13 }
 0x47e   : > { %v1038_v16 = vmul.f32 1.442695, %v1033_v14  ;;  %v1040_v17 = vmul.f32 1.442695, %v1034_v15 }
 0x47f   : > { %v1031_v18 = vpop.xlane.xlu0 %1030  ;;  %v712_v19 = vpop.permute.xlu1 %711 }
 0x480   : > { %2366 = vpow2.f32 %v1038_v16  ;;  %1140 = vrot.lane.b32.xlu1 %v712_v19, %s2700_s20  ;;  %v1035_v31 = vsub.f32 %v1017_v5, %v1031_v18  ;;  %v1674_v16 = vrot.slane %v3035_v28, %v1673_v9 }
 0x481   : > { %2368 = vpow2.f32 %v1040_v17 }
 0x482   : > { %2370 = vpow2.f32 %v1036_v29  ;;  %v1042_v33 = vmul.f32 1.442695, %v1035_v31 }
 0x483   : > { %v714_v20 = vpop.permute.xlu0 %713  ;;  %v716_v39 = vpop.permute.xlu1 %715 }
 0x484   : > { %2372 = vpow2.f32 %v1042_v33  ;;  %v1710_v33 = vld [vmem:[#allocation11 + $0x18] sm:$0xff] }
 0x487   : > { %v1065_v21 = vpop.permute.xlu0 %1064 }
 0x488   : > { %2180 = vmatpush3.msra.mxu0 %v1065_v21 }
 0x489   : > { %2189 = vmatprep.subr.mxu0 %v2694_v7 }
 0x48d   : > { %v2367_v23 = vpop.eup %2366 }
 0x48e   : > { %v1047_v24 = vsel %vm723_vm4, %v2367_v23, 0.0  ;;  %v2369_v25 = vpop.eup %2368 }
 0x48f   : > { %1048 = vadd.xlane.f32.xlu0 %v1047_v24  ;;  %v1050_v32 = vsel %vm723_vm4, %v2369_v25, 0.0  ;;  %v2371_v34 = vpop.eup %2370 }
 0x490   : > { %v1044_v36 = vsel %vm723_vm4, %v2371_v34, 0.0 }
 0x491   : > { %v2373_v37 = vpop.eup %2372 }
 0x492   : > { %v1053_v38 = vsel %vm723_vm4, %v2373_v37, 0.0 }
 0x493   : > { %1051 = vadd.xlane.f32.xlu0 %v1050_v32 }
 0x4a4   : > { %1045 = vadd.xlane.f32.xlu1 %v1044_v36  ;;  %v1708_v36 = vld [vmem:[#allocation11 + $0x8] sm:$0xff] }
 0x4a8   : > { %1054 = vadd.xlane.f32.xlu1 %v1053_v38 }
 0x4a9   : > { %1292 = vrot.lane.b32.xlu0 %v716_v39, %s2700_s20 }
 0x4b9   : > { %1216 = vrot.lane.b32.xlu1 %v714_v20, %s2700_s20 }
 0x4f2   : > { %v1141_v40 = vpop.permute.xlu1 %1140 }
 0x4f3   : > { %2185 = vmatpush3.msra.mxu1 %v1141_v40 }
 0x4f4   : > { %2194 = vmatprep.subr.mxu1 %v2694_v7 }
 0x518   : > { %v1049_v41 = vpop.xlane.xlu0 %1048 }
 0x519   : > { %2374 = vrcp.f32 %v1049_v41 }
 0x51c   : > { %v1052_v42 = vpop.xlane.xlu0 %1051 }
 0x520   : > { %v1293_v45 = vpop.permute.xlu0 %1292 }
 0x526   : > { %v2375_v43 = vpop.eup %2374 }
 0x527   : > { %v1061_v44 = vmul.f32 %v2375_v43, %v2367_v23 }
 0x529   : > { %2187 = vmatmul.mubr.msk.f32.vlgmr.msra.gmra.mxu1 %vm723_vm4, %v1061_v44 }
 0x52a   : > { %2195 = vmatpush3.msra.mxu1 %v1293_v45  ;;  %2196 = vmatprep.mubr.msk.f32.mxu1 %vm2695_vm1, %v2694_v7 }
 0x52b   : > { %2204 = vmatprep.subr.mxu1 %v2694_v7 }
 0x52d   : > { %v1046_v46 = vpop.xlane.xlu1 %1045 }
 0x52e   : > { %2376 = vrcp.f32 %v1046_v46  ;;  %v1696_v46 = vsub.s32 2, %v3032_v26 }
 0x52f   : > { %2378 = vrcp.f32 %v1052_v42 }
 0x531   : > { %v1055_v47 = vpop.xlane.xlu1 %1054 }
 0x532   : > { %2380 = vrcp.f32 %v1055_v47  ;;  %v1697_v47 = vrot.slane %v3035_v28, %v1696_v46 }
 0x535   : > { %v1217_v51 = vpop.permute.xlu1 %1216 }
 0x53b   : > { %v2377_v48 = vpop.eup %2376 }
 0x53c   : > { %v1060_v49 = vmul.f32 %v2377_v48, %v2371_v34  ;;  %v2379_v50 = vpop.eup %2378  ;;  %v1709_v34 = vld [vmem:[#allocation11 + $0x10] sm:$0xff]  ;;  %v1704_v48 = vsub.s32 3, %v3032_v26 }
 0x53d   : > { %v1062_v53 = vmul.f32 %v2379_v50, %v2369_v25 }
 0x53e   : > { %2182 = vmatmul.mubr.msk.f32.vlgmr.msra.gmra.mxu0 %vm723_vm4, %v1060_v49  ;;  %v1705_v50 = vrot.slane %v3035_v28, %v1704_v48 }
 0x53f   : > { %v2381_v52 = vpop.eup %2380  ;;  %2190 = vmatpush3.msra.mxu0 %v1217_v51  ;;  %2191 = vmatprep.mubr.msk.f32.mxu0 %vm2695_vm1, %v2694_v7 }
 0x540   : > { %v1063_v54 = vmul.f32 %v2381_v52, %v2373_v37  ;;  %2199 = vmatprep.subr.mxu0 %v2694_v7  ;;  %v1792_v37 = vld [vmem:[#allocation13 + $0x18] sm:$0xff] }
 0x542   : > { %2192 = vmatmul.mubr.msk.f32.vlgmr.msra.gmra.mxu0 %vm723_vm4, %v1062_v53  ;;  %2197 = vmatmul.mubr.msk.f32.vlgmr.msra.gmra.mxu1 %vm723_vm4, %v1063_v54  ;;  %v1791_v54 = vld [vmem:[#allocation13 + $0x10] sm:$0xff] }
 0x543   : > { %2206 = vmatprep.mubr.msk.f32.mxu1 %vm2695_vm1, %v2694_v7  ;;  %2201 = vmatprep.mubr.msk.f32.mxu0 %vm2695_vm1, %v2694_v7 }
 0x544   : > { %2205 = vmatpush3.msra.mxu1 %v1369_v55  ;;  %2200 = vmatpush3.msra.mxu0 %v1368_v56  ;;  %v1790_v55 = vld [vmem:[#allocation13 + $0x8] sm:$0xff]  ;;  %v1789_v56 = vld [vmem:[#allocation13] sm:$0xff] }
 0x545   : > { %2214 = vmatprep.subr.mxu1 %v2694_v7  ;;  %2209 = vmatprep.subr.mxu0 %v2694_v7 }
 0x5e9   : > { %v1212_v58 = vpop.f32.mrf.mxu1 }
 0x5ea   : > { %2207 = vmatmul.mubr.msk.f32.vlgmr.msra.gmra.mxu1 %vm723_vm4, %v1212_v58 }
 0x5eb   : > { %v2188_v59 = vpop.f32.mrf.mxu1  ;;  %2215 = vmatpush3.msra.mxu1 %v1371_v57  ;;  %2216 = vmatprep.mubr.msk.f32.mxu1 %vm2695_vm1, %v2694_v7  ;;  %v490_v57 = vld [vmem:[#allocation14 + $0x8] sm:$0x3] }
 0x5ec   : > { %2230 = vmatprep.subr.mxu1 %v2694_v7  ;;  %v1714_v28 = vrot.slane %v490_v57, %v512_v27 }
 0x5fe   : > { %v1136_v61 = vpop.f32.mrf.mxu0 }
 0x5ff   : > { %2202 = vmatmul.mubr.msk.f32.vlgmr.msra.gmra.mxu0 %vm723_vm4, %v1136_v61 }
 0x600   : > { %2210 = vmatpush3.msra.mxu0 %v1370_v60  ;;  %v2183_v62 = vpop.f32.mrf.mxu0  ;;  %2211 = vmatprep.mubr.msk.f32.mxu0 %vm2695_vm1, %v2694_v7 }
 0x601   : > { %2219 = vmatprep.subr.mxu0 %v2694_v7  ;;  %v1796_v62 = vrot.slane %v490_v57, %v520_v30 }
 0x602   : > { %v1288_v63 = vpop.f32.mrf.mxu0  ;;  %v1364_v0 = vpop.f32.mrf.mxu1 }
 0x603   : > { %2212 = vmatmul.mubr.msk.f32.vlgmr.msra.gmra.mxu0 %vm723_vm4, %v1288_v63  ;;  %2217 = vmatmul.mubr.msk.f32.vlgmr.msra.gmra.mxu1 %vm723_vm4, %v1364_v0 }
 0x604   : > { %v2193_v1 = vpop.f32.mrf.mxu0  ;;  %v2198_v2 = vpop.f32.mrf.mxu1  ;;  %2227 = vmatprep.mubr.msk.f32.mxu0 %vm2695_vm1, %v2694_v7  ;;  %2238 = vmatprep.mubr.msk.f32.mxu1 %vm2695_vm1, %v2694_v7 }
 0x605   : > { %2220 = vmatpush3.msra.mxu0 %v1710_v33  ;;  %2231 = vmatpush3.msra.mxu1 %v1792_v37 }
 0x606   : > { %2221 = vmatprep.subr.mxu0 %v2694_v7  ;;  %2232 = vmatprep.subr.mxu1 %v2694_v7 }
 0x607   : > { %2222 = vmatpush3.msra.mxu0 %v1709_v34  ;;  %2233 = vmatpush3.msra.mxu1 %v1791_v54 }
 0x608   : > { %2223 = vmatprep.subr.mxu0 %v2694_v7  ;;  %2234 = vmatprep.subr.mxu1 %v2694_v7 }
 0x609   : > { %2224 = vmatpush3.msra.mxu0 %v1708_v36  ;;  %2235 = vmatpush3.msra.mxu1 %v1790_v55 }
 0x60a   : > { %2225 = vmatprep.subr.mxu0 %v2694_v7  ;;  %2236 = vmatprep.subr.mxu1 %v2694_v7 }
 0x60b   : > { %2237 = vmatpush3.msra.mxu1 %v1789_v56 }
 0x6aa   : > { %v1514_v3 = vpop.f32.mrf.mxu1 }
 0x6ab   : > { %v1665_v10 = vsel %vm491_vm0, %v1514_v3, 0.0 }
 0x6ac   : > { %v2208_v4 = vpop.f32.mrf.mxu1 }
 0x6bf   : > { %v1441_v5 = vpop.f32.mrf.mxu0 }
 0x6c0   : > { %v1664_v6 = vsel %vm491_vm0, %v1441_v5, 0.0 }
 0x6c1   : > { %v2203_v8 = vpop.f32.mrf.mxu0  ;;  %v1666_v11 = vadd.f32 %v1665_v10, %v1664_v6 }
 0x6c3   : > { %v1587_v12 = vpop.f32.mrf.mxu0  ;;  %v1660_v13 = vpop.f32.mrf.mxu1 }
 0x6c4   : > { %v1667_v14 = vsel %vm491_vm0, %v1587_v12, 0.0  ;;  %v1669_v19 = vsel %vm491_vm0, %v1660_v13, 0.0 }
 0x6c5   : > { %v1668_v15 = vadd.f32 %v1667_v14, %v1666_v11  ;;  %v2213_v17 = vpop.f32.mrf.mxu0  ;;  %v2218_v18 = vpop.f32.mrf.mxu1 }
 0x6c7   : > { %v1670_v20 = vadd.f32 %v1669_v19, %v1668_v15 }
 0x6c9   : > { %v1675_v21 = vadd.f32 %v1674_v16, %v1670_v20 }
 0x6cb   : > { %v1676_v22 = vadd.f32 %v1675_v21, %v3044_v35  ;;  %v1707_v35 = vld [vmem:[#allocation11] sm:$0xff] }
 0x6cc   : > { %2226 = vmatpush3.msra.mxu0 %v1707_v35 }
 0x6cd   : > { %v1677_v23 = vsel %vm491_vm0, %v1676_v22, 0.0 }
 0x6ce   : > { %1678 = vadd.xlane.f32.xlu1 %v1677_v23 }
 0x757   : > { %v1679_v24 = vpop.xlane.xlu1 %1678 }
 0x758   : > { %v1680_v25 = vmul.f32 0.03125, %v1679_v24 }
 0x75a   : > { %v1681_v29 = vsub.f32 %v1676_v22, %v1680_v25 }
 0x75c   : > { %v1682_v31 = vmul.f32 %v1681_v29, %v1681_v29  ;;  %v1698_v49 = vmul.f32 %v1697_v47, %v1681_v29 }
 0x75e   : > { %v1683_v32 = vsel %vm491_vm0, %v1682_v31, 0.0 }
 0x75f   : > { %1684 = vadd.xlane.f32.xlu0 %v1683_v32 }
 0x7e8   : > { %v1685_v38 = vpop.xlane.xlu0 %1684 }
 0x7e9   : > { %v1686_v39 = vmul.f32 0.032258064, %v1685_v38 }
 0x7eb   : > { %2382 = vrsqrt.f32 %v1686_v39  ;;  %vm1689_vm5 = vcmp.eq.f32.partialorder %v1686_v39, inf  ;;  %v1692_v42 = vand.u32 2147483648, %v1686_v39  ;;  %vm1691_vm6 = vcmp.eq.f32.partialorder %v1686_v39, 0.0 }
 0x7f8   : > { %v2383_v40 = vpop.eup %2382 }
 0x7f9   : > { %v1688_v41 = vmul.f32 %v2383_v40, %v1686_v39 }
 0x7fb   : > { %v1690_v43 = vsel %vm1689_vm5, %v1686_v39, %v1688_v41 }
 0x7fc   : > { %v1693_v44 = vsel %vm1691_vm6, %v1692_v42, %v1690_v43 }
 0x7fd   : > { %v1699_v45 = vadd.f32 1e-05, %v1693_v44 }
 0x7ff   : > { %2384 = vrcp.f32 %v1699_v45 }
 0x80c   : > { %v2385_v51 = vpop.eup %2384 }
 0x80d   : > { %v1701_v52 = vmul.f32 %v2385_v51, %v1698_v49 }
 0x80f   : > { %v1706_v53 = vadd.f32 %v1705_v50, %v1701_v52 }
 0x811   : > { %2228 = vmatmul.mubr.msk.f32.vlgmr.msra.gmra.mxu0 %vm491_vm0, %v1706_v53 }
 0x8d1   : > { %v1784_v58 = vpop.f32.mrf.mxu0 }
 0x8d2   : > { %v1785_v59 = vadd.f32 %v1784_v58, %v1714_v28 }
 0x8d3   : > { %v2229_v60 = vpop.f32.mrf.mxu0 }
 0x8d4   : > { %v1788_v61 = vmax.f32 %v1785_v59, 0.0 }
 0x8d6   : > { %2239 = vmatmul.mubr.msk.f32.vlgmr.msra.gmra.mxu1 %vm491_vm0, %v1788_v61 }
 0x996   : > { %v1866_v63 = vpop.f32.mrf.mxu1 }
 0x997   : > { %v1867_v7 = vadd.f32 %v1866_v63, %v1796_v62 }
 0x998   : > { %v2240_v0 = vpop.f32.mrf.mxu1 }
 0x999   : > { %v1870_v1 = vadd.f32 %v1867_v7, %v1706_v53 }
 0x99b   : > { %1871 = vst.msk [vmem:[%s482_s28] sm:$0xff] %vm491_vm0, %v1870_v1 }
 0x99c   : > { %2611 = shalt.err (!%p2608_p12)
}
 0x99d   : > { %s2612_s8 = scalar_lea.hbm %s1884_s21, 128  ;;  %s2616_s25 = scalar_lea.hbm %s3209_s9, 256 }
 0x99e   : > { %p2613_p0 = scmp.ne.s32.totalorder %s1884_s21, %s2612_s8  ;;  %p2617_p11 = scmp.lt.s32.totalorder %s1884_s21, %s3209_s9 }
 0x99f   : > { %p2618_p13 = scmp.lt.s32.totalorder %s2616_s25, %s2612_s8 }
 0x9a0   : > { %p2614_p8 = pnand %p2613_p0, %p3244_p1 }
 0x9a1   : > { %p2619_p5 = por %p2618_p13, %p2617_p11 }
 0x9a2   : > { %p2615_p10 = pneg %p2614_p8 }
 0x9a4   : > { %p2620_p9 = pnand %p2619_p5, %p2615_p10 }
 0x9a6   : > { %2623 = shalt.err (!%p2620_p9)
}
 0x9a7   : > { %2269 = dma.vmem_to_hbm [thread:$0]  (%p3244_p1), %s1887_s19, 128, %s1884_s21, %s1873_s23  }
 0x9a8 PF: > { %s1898_s5 = sand.u32 1, %s2670_s30   ;;  %p3245_p4 = scmp.ne.s32.totalorder %s3232_s17, 0 }
 0x9a9   : > { %p3246_p6 = scmp.ge.s32.totalorder %s2682_s12, 2  ;;  %s1899_s20 = scalar_lea.sflag [#allocation4], %s1898_s5 }
 0x9ab   : > { %p2298_p2 = pnand %p3246_p6, %p3245_p4 }
 0x9ad   : > { %p2299_p3 = pneg %p2298_p2 }
 0x9af   : > { %2665 = dma.done.wait (%p2299_p3), %s1899_s20, 128  }
 0x9b0   : > { %2667 = vsyncadd (%p2299_p3), %s1899_s20, 4294967168  ;;  %p28_p7 = scmp.ge.s32.totalorder %s2873_s22, 4   ;;  %s3247_s30 = smov %s2674_s10 }
 0x9b1   : > { %s3248_s10 = smov %s2678_s11  ;;  %s3249_s11 = smov %s2884_s29 }
 0x9b2   : > { %s3250_s12 = smov %s2873_s22  ;;  %30 = sbr.rel (!%p28_p7) target bundleno = 17 (0x11), region = 141 }
 0x9b7   :  { %1904 = vsyncpa [#allocation3], 1 }
 0x9b8   :  { %1906 = vsyncpa [#allocation3 + $0x1], 1 }
 0x9b9   :  { %1907 = vsyncpa [#allocation6], 1 }
 0x9ba   :  { %1909 = vsyncpa [#allocation6 + $0x1], 1 }
 0x9bb   :  { %1910 = vsyncpa [#allocation9], 1 }
 0x9bc   :  { %1911 = vsyncpa [#allocation12], 1 }
 0x9bd   :  { %1912 = vsyncpa [#allocation15], 1 }
 0x9be   :  { %1913 = vsyncpa [#allocation4], 1 }
 0x9bf   :  { %1915 = vsyncpa [#allocation4 + $0x1], 1 }

</bundles_post_ra>
